<compile_context>
chip_gen: v7x
topology: tpu7x:2x2x1
jax: 0.10.0
libtpu: 0.0.40
codegen_flags: <defaults>
</compile_context>

<pallas_src>
import functools
import math

import jax
import jax.numpy as jnp
from jax import lax
from jax.experimental import pallas as pl
from jax.experimental.pallas import tpu as pltpu

# WeightedAdaptiveWingLoss hyper-parameters (module __init__ defaults).
W_LOSS = 10.0
ALPHA = 2.1
OMEGA = 14.0
EPSILON = 1.0
THETA = 0.5
DILATE_THRESH = 0.2

_MiB = 1024 * 1024


def _wawl_kernel(yp_ref, y_ref, out_ref, *, h):
    # Tile layout: (tc, L, W*H); lane-dense last axis.
    y = y_ref[...].astype(jnp.float32)
    yp = yp_ref[...].astype(jnp.float32)
    tc, l, wh = y.shape

    # ---- boundary masks at broadcast-minimal shapes -------------------------
    lane = lax.broadcasted_iota(jnp.int32, (1, 1, wh), 2)   # lane position
    sub = lax.broadcasted_iota(jnp.int32, (1, l, 1), 1)     # sublane position
    if (h & (h - 1)) == 0:                                  # power-of-two H
        hpos = lane & (h - 1)
    else:
        hpos = lane % h
    h_first, h_last = hpos == 0, hpos == h - 1
    w_first, w_last = lane < h, lane >= wh - h
    l_first, l_last = sub == 0, sub == l - 1

    def max3(x, shift, axis, first_mask, last_mask):
        # Flat 3-window max, scipy 'reflect' boundary: the reflected neighbor is
        # already inside the window, so out-of-range neighbors can simply be
        # replaced by the center value (no -inf constant needed).
        prev_n = jnp.where(first_mask, x, jnp.roll(x, shift, axis=axis))
        next_n = jnp.where(last_mask, x, jnp.roll(x, -shift, axis=axis))
        return jnp.maximum(x, jnp.maximum(prev_n, next_n))

    # ---- generate_weight_map: per-channel 3x3x3 grey dilation, threshold 0.2 --
    d = max3(y, 1, 1, l_first, l_last)   # L neighbors (sublane roll)
    d = max3(d, h, 2, w_first, w_last)   # W neighbors (lane roll by H)
    d = max3(d, 1, 2, h_first, h_last)   # H neighbors (lane roll by 1)
    weight = jnp.where(d > DILATE_THRESH, W_LOSS + 1.0, 1.0)

    # ---- AdaptiveWingLoss (elementwise) --------------------------------------
    log_r = math.log(THETA / EPSILON)            # Python float constant
    e1 = ALPHA - y                               # > 0 for heatmap targets
    p = jnp.exp(e1 * log_r)                      # (theta/eps) ** (alpha - y)
    p_m1 = p * (EPSILON / THETA)                 # exact: r^(e-1) = r^e / r
    a = OMEGA * pl.reciprocal(1.0 + p, approx=True) * e1 * p_m1 * (1.0 / EPSILON)
    c = THETA * a - OMEGA * jnp.log(1.0 + p)

    delta = jnp.abs(y - yp)
    # |d/eps| ** (alpha - y) via exp/log; exp underflow handles delta -> 0
    # (matches 0**positive == 0), no compare/select guards on the EUP chain.
    pow1 = jnp.exp(e1 * jnp.log(jnp.maximum(delta * (1.0 / EPSILON), 1e-30)))
    loss1 = OMEGA * jnp.log(1.0 + pow1)
    loss2 = a * delta - c
    loss = jnp.where(delta < THETA, loss1, loss2)

    weighted = loss * weight

    # ---- lane-dense partial sums ---------------------------------------------
    red = jnp.sum(weighted, axis=0)              # (l, wh)
    if l % 8 == 0 and l >= 8:
        # Keep 8 sublanes: fold L in aligned groups of 8 (tile-aligned slices),
        # avoiding the cross-sublane reduction and masked single-row stores.
        acc = red[0:8, :]
        for s in range(8, l, 8):
            acc = acc + red[s:s + 8, :]
        out_ref[...] = acc.reshape(1, 8, wh)
    else:
        out_ref[...] = jnp.sum(red, axis=0).reshape(1, 1, wh)


def _vmem_limit_bytes():
    """Generation-aware scoped-VMEM limit (v7x: 64 MiB physical, v5e/v6e: 128)."""
    cap = 64 * _MiB  # conservative fallback = v7x physical capacity
    try:
        cap = int(pltpu.get_tpu_info().vmem_capacity_bytes)
    except Exception:
        pass
    return max(16 * _MiB, min(cap - 16 * _MiB, 96 * _MiB))


def _pick_channel_tile(c, per_channel_elems, in_itemsize, vmem_limit, min_grid_steps=4):
    # Pipeline buffers: 2 inputs x 2 buffers x tile in native dtype, plus ~5 live
    # f32 arrays per element inside the body (inputs cast to f32, dilate,
    # weighted-loss chain); elementwise chains are fused per-vreg by Mosaic.
    bytes_per_channel = per_channel_elems * (4 * in_itemsize + 5 * 4)
    budget = (vmem_limit * 3) // 4
    tc = max(1, min(c, budget // max(1, bytes_per_channel)))
    # Keep >= min_grid_steps grid steps so the channel axis shards across TCs
    # (v7x megacore) and the DMA pipeline has work to overlap.
    tc = min(tc, max(1, c // min_grid_steps))
    return int(tc)


def weighted_adaptive_wing_loss(y_pred, y, *, reduction="mean"):
    assert y_pred.shape == y.shape and y_pred.ndim == 4, "expected [C, L, W, H]"
    c, l, w, h = y.shape
    wh = w * h
    n_elems = c * l * wh

    # Lane-dense layout: flatten (W, H) into the last axis (contiguous, no copy).
    yp2 = y_pred.reshape(c, l, wh)
    y2 = y.reshape(c, l, wh)

    itemsize = jnp.dtype(y.dtype).itemsize
    vmem_limit = _vmem_limit_bytes()
    tc = _pick_channel_tile(c, l * wh, itemsize, vmem_limit)
    num_tiles = pl.cdiv(c, tc)
    c_pad = num_tiles * tc
    if c_pad != c:
        # Zero-pad BOTH tensors: zero target / zero prediction contribute exactly
        # 0 to the weighted sum for this loss, so padding is correctness-free.
        pad = ((0, c_pad - c), (0, 0), (0, 0))
        yp2 = jnp.pad(yp2, pad)
        y2 = jnp.pad(y2, pad)

    ls = 8 if (l % 8 == 0 and l >= 8) else 1

    kernel = functools.partial(_wawl_kernel, h=h)
    cost = pl.CostEstimate(
        flops=40 * n_elems,
        transcendentals=6 * n_elems,
        bytes_accessed=2 * n_elems * itemsize + num_tiles * ls * wh * 4,
    )
    partials = pl.pallas_call(
        kernel,
        out_shape=jax.ShapeDtypeStruct((num_tiles, ls, wh), jnp.float32),
        grid=(num_tiles,),
        in_specs=[
            pl.BlockSpec((tc, l, wh), lambda i: (i, 0, 0)),
            pl.BlockSpec((tc, l, wh), lambda i: (i, 0, 0)),
        ],
        out_specs=pl.BlockSpec((1, ls, wh), lambda i: (i, 0, 0)),
        compiler_params=pltpu.CompilerParams(
            dimension_semantics=("parallel",),
            vmem_limit_bytes=vmem_limit,
        ),
        cost_estimate=cost,
    )(yp2, y2)  # native input dtype; f32 cast happens in-kernel

    total = jnp.sum(partials)
    if reduction == "sum":
        return total
    return total / float(c * l * w * h)


def _reference(y_pred, y, reduction="mean"):
    # Independent pure-JAX reference. Dilation via reduce_window ('SAME' with
    # -inf init equals scipy 'reflect' for a flat 3x3x3 window).
    yf = y.astype(jnp.float32)
    ypf = y_pred.astype(jnp.float32)
    dil = lax.reduce_window(yf, -jnp.inf, lax.max, (1, 3, 3, 3), (1, 1, 1, 1), "SAME")
    m = (dil > DILATE_THRESH).astype(jnp.float32)
    r = THETA / EPSILON
    A = OMEGA * (1.0 / (1.0 + r ** (ALPHA - yf))) * (ALPHA - yf) * r ** (ALPHA - yf - 1.0) / EPSILON
    C = THETA * A - OMEGA * jnp.log(1.0 + r ** (ALPHA - yf))
    delta = jnp.abs(yf - ypf)
    loss1 = OMEGA * jnp.log(1.0 + jnp.abs((yf - ypf) / EPSILON) ** (ALPHA - yf))
    loss2 = A * delta - C
    loss = jnp.where(delta < THETA, loss1, loss2)
    weighted = loss * (W_LOSS * m + 1.0)
    return weighted.sum() if reduction == "sum" else weighted.mean()


if __name__ == "__main__":
    key = jax.random.PRNGKey(0)
    k1, k2 = jax.random.split(key)
    shape = (4, 8, 16, 16)  # [C, L, W, H]
    # Sparse-ish targets in [0, 1): dilation threshold hits both branches.
    y = jax.random.uniform(k1, shape, dtype=jnp.float32) ** 3
    y_pred = y + 0.45 * jax.random.normal(k2, shape, dtype=jnp.float32)

    loss = weighted_adaptive_wing_loss(y_pred, y)
    loss = jax.block_until_ready(loss)

    ref = _reference(y_pred, y)
    assert bool(jnp.isfinite(loss))
    # approx reciprocal + exp-identity perturb results at the ~1e-4 relative level.
    assert jnp.allclose(loss, ref, rtol=2e-3, atol=1e-4), (float(loss), float(ref))
    print("KERNEL_OK")
</pallas_src>

<mosaic_0001>
module attributes {stable_mosaic.version = 11 : i64} {
  func.func @_wawl_kernel(%arg0: i32, %arg1: memref<1x8x256xf32, #tpu.memory_space<vmem>>, %arg2: memref<1x8x256xf32, #tpu.memory_space<vmem>>, %arg3: memref<1x8x256xf32, #tpu.memory_space<vmem>>) attributes {dimension_semantics = [#tpu.dimension_semantics<parallel>], iteration_bounds = array<i64: 4>, scalar_prefetch = 0 : i64, scratch_operands = 0 : i64, tpu.core_type = #tpu.core_type<tc>, window_params = [{transform_indices = @transform_0, window_bounds = array<i64: 1, 8, 256>}, {transform_indices = @transform_1, window_bounds = array<i64: 1, 8, 256>}, {transform_indices = @transform_2, window_bounds = array<i64: 1, 8, 256>}]} {
    %c0 = arith.constant 0 : index
    %c0_0 = arith.constant 0 : index
    %c0_1 = arith.constant 0 : index
    %0 = vector.load %arg2[%c0, %c0_0, %c0_1] : memref<1x8x256xf32, #tpu.memory_space<vmem>>, vector<1x8x256xf32>
    %c0_2 = arith.constant 0 : index
    %c0_3 = arith.constant 0 : index
    %c0_4 = arith.constant 0 : index
    %1 = vector.load %arg1[%c0_2, %c0_3, %c0_4] : memref<1x8x256xf32, #tpu.memory_space<vmem>>, vector<1x8x256xf32>
    %2 = tpu.iota {dimensions = array<i32: 2>} : vector<1x1x256xi32>
    %3 = tpu.iota {dimensions = array<i32: 1>} : vector<1x8x1xi32>
    %c15_i32 = arith.constant 15 : i32
    %4 = vector.broadcast %c15_i32 : i32 to vector<1x1x256xi32>
    %5 = arith.andi %2, %4 : vector<1x1x256xi32>
    %c0_i32 = arith.constant 0 : i32
    %6 = vector.broadcast %c0_i32 : i32 to vector<1x1x256xi32>
    %7 = arith.cmpi eq, %5, %6 : vector<1x1x256xi32>
    %c15_i32_5 = arith.constant 15 : i32
    %8 = vector.broadcast %c15_i32_5 : i32 to vector<1x1x256xi32>
    %9 = arith.cmpi eq, %5, %8 : vector<1x1x256xi32>
    %c16_i32 = arith.constant 16 : i32
    %10 = vector.broadcast %c16_i32 : i32 to vector<1x1x256xi32>
    %11 = arith.cmpi slt, %2, %10 : vector<1x1x256xi32>
    %c240_i32 = arith.constant 240 : i32
    %12 = vector.broadcast %c240_i32 : i32 to vector<1x1x256xi32>
    %13 = arith.cmpi sge, %2, %12 : vector<1x1x256xi32>
    %c0_i32_6 = arith.constant 0 : i32
    %14 = vector.broadcast %c0_i32_6 : i32 to vector<1x8x1xi32>
    %15 = arith.cmpi eq, %3, %14 : vector<1x8x1xi32>
    %c7_i32 = arith.constant 7 : i32
    %16 = vector.broadcast %c7_i32 : i32 to vector<1x8x1xi32>
    %17 = arith.cmpi eq, %3, %16 : vector<1x8x1xi32>
    %18 = vector.extract_strided_slice %0 {offsets = [0, 7, 0], sizes = [1, 1, 256], strides = [1, 1, 1]} : vector<1x8x256xf32> to vector<1x1x256xf32>
    %19 = vector.extract_strided_slice %0 {offsets = [0, 0, 0], sizes = [1, 7, 256], strides = [1, 1, 1]} : vector<1x8x256xf32> to vector<1x7x256xf32>
    %20 = tpu.concatenate %18, %19 in 1 : vector<1x1x256xf32>, vector<1x7x256xf32> -> vector<1x8x256xf32>
    %21 = vector.shape_cast %15 : vector<1x8x1xi1> to vector<1x8x1xi1>
    %22 = vector.broadcast %21 : vector<1x8x1xi1> to vector<1x8x256xi1>
    %23 = arith.select %22, %0, %20 : vector<1x8x256xi1>, vector<1x8x256xf32>
    %24 = vector.extract_strided_slice %0 {offsets = [0, 1, 0], sizes = [1, 7, 256], strides = [1, 1, 1]} : vector<1x8x256xf32> to vector<1x7x256xf32>
    %25 = vector.extract_strided_slice %0 {offsets = [0, 0, 0], sizes = [1, 1, 256], strides = [1, 1, 1]} : vector<1x8x256xf32> to vector<1x1x256xf32>
    %26 = tpu.concatenate %24, %25 in 1 : vector<1x7x256xf32>, vector<1x1x256xf32> -> vector<1x8x256xf32>
    %27 = vector.shape_cast %17 : vector<1x8x1xi1> to vector<1x8x1xi1>
    %28 = vector.broadcast %27 : vector<1x8x1xi1> to vector<1x8x256xi1>
    %29 = arith.select %28, %0, %26 : vector<1x8x256xi1>, vector<1x8x256xf32>
    %30 = arith.maximumf %23, %29 : vector<1x8x256xf32>
    %31 = arith.maximumf %0, %30 : vector<1x8x256xf32>
    %32 = vector.extract_strided_slice %31 {offsets = [0, 0, 240], sizes = [1, 8, 16], strides = [1, 1, 1]} : vector<1x8x256xf32> to vector<1x8x16xf32>
    %33 = vector.extract_strided_slice %31 {offsets = [0, 0, 0], sizes = [1, 8, 240], strides = [1, 1, 1]} : vector<1x8x256xf32> to vector<1x8x240xf32>
    %34 = tpu.concatenate %32, %33 in 2 : vector<1x8x16xf32>, vector<1x8x240xf32> -> vector<1x8x256xf32>
    %35 = vector.shape_cast %11 : vector<1x1x256xi1> to vector<1x1x256xi1>
    %36 = vector.broadcast %35 : vector<1x1x256xi1> to vector<1x8x256xi1>
    %37 = arith.select %36, %31, %34 : vector<1x8x256xi1>, vector<1x8x256xf32>
    %38 = vector.extract_strided_slice %31 {offsets = [0, 0, 16], sizes = [1, 8, 240], strides = [1, 1, 1]} : vector<1x8x256xf32> to vector<1x8x240xf32>
    %39 = vector.extract_strided_slice %31 {offsets = [0, 0, 0], sizes = [1, 8, 16], strides = [1, 1, 1]} : vector<1x8x256xf32> to vector<1x8x16xf32>
    %40 = tpu.concatenate %38, %39 in 2 : vector<1x8x240xf32>, vector<1x8x16xf32> -> vector<1x8x256xf32>
    %41 = vector.shape_cast %13 : vector<1x1x256xi1> to vector<1x1x256xi1>
    %42 = vector.broadcast %41 : vector<1x1x256xi1> to vector<1x8x256xi1>
    %43 = arith.select %42, %31, %40 : vector<1x8x256xi1>, vector<1x8x256xf32>
    %44 = arith.maximumf %37, %43 : vector<1x8x256xf32>
    %45 = arith.maximumf %31, %44 : vector<1x8x256xf32>
    %46 = vector.extract_strided_slice %45 {offsets = [0, 0, 255], sizes = [1, 8, 1], strides = [1, 1, 1]} : vector<1x8x256xf32> to vector<1x8x1xf32>
    %47 = vector.extract_strided_slice %45 {offsets = [0, 0, 0], sizes = [1, 8, 255], strides = [1, 1, 1]} : vector<1x8x256xf32> to vector<1x8x255xf32>
    %48 = tpu.concatenate %46, %47 in 2 : vector<1x8x1xf32>, vector<1x8x255xf32> -> vector<1x8x256xf32>
    %49 = vector.shape_cast %7 : vector<1x1x256xi1> to vector<1x1x256xi1>
    %50 = vector.broadcast %49 : vector<1x1x256xi1> to vector<1x8x256xi1>
    %51 = arith.select %50, %45, %48 : vector<1x8x256xi1>, vector<1x8x256xf32>
    %52 = vector.extract_strided_slice %45 {offsets = [0, 0, 1], sizes = [1, 8, 255], strides = [1, 1, 1]} : vector<1x8x256xf32> to vector<1x8x255xf32>
    %53 = vector.extract_strided_slice %45 {offsets = [0, 0, 0], sizes = [1, 8, 1], strides = [1, 1, 1]} : vector<1x8x256xf32> to vector<1x8x1xf32>
    %54 = tpu.concatenate %52, %53 in 2 : vector<1x8x255xf32>, vector<1x8x1xf32> -> vector<1x8x256xf32>
    %55 = vector.shape_cast %9 : vector<1x1x256xi1> to vector<1x1x256xi1>
    %56 = vector.broadcast %55 : vector<1x1x256xi1> to vector<1x8x256xi1>
    %57 = arith.select %56, %45, %54 : vector<1x8x256xi1>, vector<1x8x256xf32>
    %58 = arith.maximumf %51, %57 : vector<1x8x256xf32>
    %59 = arith.maximumf %45, %58 : vector<1x8x256xf32>
    %cst = arith.constant 2.000000e-01 : f32
    %60 = vector.broadcast %cst : f32 to vector<1x8x256xf32>
    %61 = arith.cmpf ogt, %59, %60 : vector<1x8x256xf32>
    %cst_7 = arith.constant 1.100000e+01 : f32
    %cst_8 = arith.constant 1.000000e+00 : f32
    %62 = vector.broadcast %cst_7 : f32 to vector<1x8x256xf32>
    %63 = vector.broadcast %cst_8 : f32 to vector<1x8x256xf32>
    %64 = arith.select %61, %62, %63 : vector<1x8x256xi1>, vector<1x8x256xf32>
    %cst_9 = arith.constant 2.100000e+00 : f32
    %65 = vector.broadcast %cst_9 : f32 to vector<1x8x256xf32>
    %66 = arith.subf %65, %0 : vector<1x8x256xf32>
    %cst_10 = arith.constant -0.693147182 : f32
    %67 = vector.broadcast %cst_10 : f32 to vector<1x8x256xf32>
    %68 = arith.mulf %66, %67 : vector<1x8x256xf32>
    %69 = math.exp %68 : vector<1x8x256xf32>
    %cst_11 = arith.constant 2.000000e+00 : f32
    %70 = vector.broadcast %cst_11 : f32 to vector<1x8x256xf32>
    %71 = arith.mulf %69, %70 : vector<1x8x256xf32>
    %cst_12 = arith.constant 1.000000e+00 : f32
    %72 = vector.broadcast %cst_12 : f32 to vector<1x8x256xf32>
    %73 = arith.addf %72, %69 : vector<1x8x256xf32>
    %74 = tpu.reciprocal %73 {approx = true} : vector<1x8x256xf32> -> vector<1x8x256xf32>
    %cst_13 = arith.constant 1.400000e+01 : f32
    %75 = vector.broadcast %cst_13 : f32 to vector<1x8x256xf32>
    %76 = arith.mulf %75, %74 : vector<1x8x256xf32>
    %77 = arith.mulf %76, %66 : vector<1x8x256xf32>
    %78 = arith.mulf %77, %71 : vector<1x8x256xf32>
    %cst_14 = arith.constant 1.000000e+00 : f32
    %79 = vector.broadcast %cst_14 : f32 to vector<1x8x256xf32>
    %80 = arith.mulf %78, %79 : vector<1x8x256xf32>
    %cst_15 = arith.constant 5.000000e-01 : f32
    %81 = vector.broadcast %cst_15 : f32 to vector<1x8x256xf32>
    %82 = arith.mulf %81, %80 : vector<1x8x256xf32>
    %cst_16 = arith.constant 1.000000e+00 : f32
    %83 = vector.broadcast %cst_16 : f32 to vector<1x8x256xf32>
    %84 = arith.addf %83, %69 : vector<1x8x256xf32>
    %85 = math.log %84 : vector<1x8x256xf32>
    %cst_17 = arith.constant 1.400000e+01 : f32
    %86 = vector.broadcast %cst_17 : f32 to vector<1x8x256xf32>
    %87 = arith.mulf %86, %85 : vector<1x8x256xf32>
    %88 = arith.subf %82, %87 : vector<1x8x256xf32>
    %89 = arith.subf %0, %1 : vector<1x8x256xf32>
    %90 = math.absf %89 : vector<1x8x256xf32>
    %cst_18 = arith.constant 1.000000e+00 : f32
    %91 = vector.broadcast %cst_18 : f32 to vector<1x8x256xf32>
    %92 = arith.mulf %90, %91 : vector<1x8x256xf32>
    %cst_19 = arith.constant 1.000000e-30 : f32
    %93 = vector.broadcast %cst_19 : f32 to vector<1x8x256xf32>
    %94 = arith.maximumf %92, %93 : vector<1x8x256xf32>
    %95 = math.log %94 : vector<1x8x256xf32>
    %96 = arith.mulf %66, %95 : vector<1x8x256xf32>
    %97 = math.exp %96 : vector<1x8x256xf32>
    %cst_20 = arith.constant 1.000000e+00 : f32
    %98 = vector.broadcast %cst_20 : f32 to vector<1x8x256xf32>
    %99 = arith.addf %98, %97 : vector<1x8x256xf32>
    %100 = math.log %99 : vector<1x8x256xf32>
    %cst_21 = arith.constant 1.400000e+01 : f32
    %101 = vector.broadcast %cst_21 : f32 to vector<1x8x256xf32>
    %102 = arith.mulf %101, %100 : vector<1x8x256xf32>
    %103 = arith.mulf %80, %90 : vector<1x8x256xf32>
    %104 = arith.subf %103, %88 : vector<1x8x256xf32>
    %cst_22 = arith.constant 5.000000e-01 : f32
    %105 = vector.broadcast %cst_22 : f32 to vector<1x8x256xf32>
    %106 = arith.cmpf olt, %90, %105 : vector<1x8x256xf32>
    %107 = arith.select %106, %102, %104 : vector<1x8x256xi1>, vector<1x8x256xf32>
    %108 = arith.mulf %107, %64 : vector<1x8x256xf32>
    %cst_23 = arith.constant dense<0.000000e+00> : vector<8x256xf32>
    %109 = vector.multi_reduction <add>, %108, %cst_23 [0] : vector<1x8x256xf32> to vector<8x256xf32>
    %110 = vector.shape_cast %109 : vector<8x256xf32> to vector<1x8x256xf32>
    %c0_24 = arith.constant 0 : index
    %c0_25 = arith.constant 0 : index
    %c0_26 = arith.constant 0 : index
    %111 = vector.load %arg3[%c0_24, %c0_25, %c0_26] : memref<1x8x256xf32, #tpu.memory_space<vmem>>, vector<1x8x256xf32>
    tpu.vector_store %arg3[%c0_24, %c0_25, %c0_26], %110 {strides = array<i32>} : memref<1x8x256xf32, #tpu.memory_space<vmem>>, vector<1x8x256xf32>,
    return
  }
  func.func @transform_0(%arg0: i32) -> (i32, i32, i32) {
    %c0_i32 = arith.constant 0 : i32
    %c0_i32_0 = arith.constant 0 : i32
    %c0_i32_1 = arith.constant 0 : i32
    return %arg0, %c0_i32, %c0_i32_0 : i32, i32, i32
  }
  func.func @transform_1(%arg0: i32) -> (i32, i32, i32) {
    %c0_i32 = arith.constant 0 : i32
    %c0_i32_0 = arith.constant 0 : i32
    %c0_i32_1 = arith.constant 0 : i32
    return %arg0, %c0_i32, %c0_i32_0 : i32, i32, i32
  }
  func.func @transform_2(%arg0: i32) -> (i32, i32, i32) {
    %c0_i32 = arith.constant 0 : i32
    %c0_i32_0 = arith.constant 0 : i32
    %c0_i32_1 = arith.constant 0 : i32
    return %arg0, %c0_i32, %c0_i32_0 : i32, i32, i32
  }
}

</mosaic_0001>

<bundles_post_ra>
// kernel: tpu_custom_call.1
= control target key start
LH: loop header
LB: loop body
LE: loop exit
PB: predicated region body
PF: predicated region fallthrough
CT: control target
= control target key end

     0   :  { %7 = vsyncpa [#allocation3], 0  ;;  %s1032_s0 = inlined_call_operand.hbm [shape: f32[4,8,256], index: 0, kind: input, shape index: {}]   ;;  %s1033_s1 = inlined_call_operand.hbm [shape: f32[4,8,256], index: 1, kind: input, shape index: {}]   ;;  %s1034_s2 = inlined_call_operand.hbm [shape: f32[4,8,256], index: 2, kind: output, shape index: {}]  }
   0x1   :  { %9 = vsyncpa [#allocation3 + $0x1], 0 }
   0x2   :  { %10 = vsyncpa [#allocation6], 0 }
   0x3   :  { %12 = vsyncpa [#allocation6 + $0x1], 0 }
   0x4   :  { %13 = vsyncpa [#allocation4], 0 }
   0x5   :  { %15 = vsyncpa [#allocation4 + $0x1], 0  ;;  %s759_s9 = smov 0   ;;  %s761_s10 = smov 0  }
   0x6   :  { %s763_s11 = smov 0   ;;  %s765_s12 = smov 0  }
   0x7 LB: > { %s780_s13 = sadd.s32 4294967295, %s734_s12   ;;  %s503_s14 = sadd.s32 4294967294, %s734_s12   ;;  %s734_s12 = sphi %s765_s12, %s1060_s12   ;;  %s730_s11 = sphi %s763_s11, %s1059_s11   ;;  %s726_s10 = sphi %s761_s10, %s1058_s10   ;;  %s722_s9 = sphi %s759_s9, %s1057_s9  }
   0x8   : > { %s784_s15 = sadd.s32 1, %s734_s12   ;;  %s28_s16 = sadd.s32 1, %s730_s11 }
   0x9   : > { %s25_s17 = ssub.s32 %s734_s12, %s784_s15  ;;  %p35_p0 = scmp.ne.s32.totalorder %s730_s11, %s726_s10 }
   0xa   : > { %p26_p1 = scmp.eq.s32.totalorder %s25_s17, 0  ;;  %p36_p2 = scmp.eq.s32.totalorder %s734_s12, 0 }
   0xb   : > { %p41_p3 = scmp.ne.s32.totalorder %s726_s10, %s722_s9  ;;  %p42_p4 = scmp.eq.s32.totalorder %s780_s13, 0 }
   0xc   : > { %s796_s18 = scalar_select %p26_p1, %s730_s11, %s28_s16  }
   0xd   : > { %p798_p5 = por %p36_p2, %p35_p0  ;;  %p802_p6 = por %p42_p4, %p41_p3 }
   0xe   : > { %p91_p7 = scmp.eq.s32.totalorder %s780_s13, 3  ;;  %p97_p8 = scmp.eq.s32.totalorder %s503_s14, 3 }
   0xf   : > { %s1038_s20 = scalar_select %p802_p6, 1, 0 }
  0x10   : > { %p541_p9 = scmp.lt.s32.totalorder %s734_s12, 4  ;;  %p808_p10 = por %p91_p7, %p35_p0 }
  0x11   : > { %p812_p11 = por %p97_p8, %p41_p3  ;;  %s817_s23 = sand.u32 1, %s730_s11  }
  0x12   : > { %s1039_s21 = scalar_select %p808_p10, 1, 0 }
  0x13   : > { %s1040_s22 = scalar_select %p812_p11, 1, 0 }
  0x14   : > { %s521_s24 = sshll.u32 %s734_s12, 8  ;;  %s506_s25 = sshll.u32 %s817_s23, 4 }
  0x15   : > { %s826_s28 = scalar_lea.hbm %s1032_s0, %s521_s24  ;;  %s121_s29 = scalar_lea.vmem [#allocation2], %s506_s25 }
  0x16   : > { %s129_s30 = sshll.u32 %s121_s29, 4  ;;  %p832_p12 = pnand %p541_p9, %p798_p5  ;;  %s836_s30 = int_to_ptr.vmem [resolvable:$true] %s129_s30 }
  0x17   : > { %s118_s4 = scalar_lea.sflag [#allocation3], %s817_s23  ;;  %s604_s5 = scalar_lea.hbm %s826_s28, 256 }
  0x18   : > { %p605_p1 = scmp.ne.s32.totalorder %s826_s28, %s604_s5  ;;  %p606_p2 = pneg %p832_p12 }
  0x19   : > { %s609_s8 = scalar_lea.hbm %s1032_s0, 1024  ;;  %p610_p5 = scmp.lt.u32.totalorder %s826_s28, %s1032_s0 }
  0x1a   : > { %p607_p3 = pnand %p606_p2, %p605_p1  ;;  %p611_p7 = scmp.lt.u32.totalorder %s609_s8, %s604_s5 }
  0x1b   : > { %p613_p9 = scmp.lt.u32.totalorder %s604_s5, %s826_s28 }
  0x1c   : > { %p608_p4 = pneg %p607_p3  ;;  %p612_p8 = por %p611_p7, %p610_p5 }
  0x1e   : > { %p614_p13 = por %p613_p9, %p612_p8 }
  0x20   : > { %p615_p0 = pnand %p614_p13, %p608_p4 }
  0x22   : > { %618 = shalt.err (!%p615_p0)
}
  0x23   : > { %s619_s17 = scalar_lea.vmem %s836_s30, 256  ;;  %s736_s19 = smov [#allocation2]  }
  0x24   : > { %p620_p1 = scmp.ne.s32.totalorder %s836_s30, %s619_s17  ;;  %s624_s26 = sshll.u32 %s736_s19, 4  ;;  %s625_s26 = int_to_ptr.vmem [resolvable:$false] %s624_s26 }
  0x25   : > { %s626_s27 = scalar_lea.vmem %s625_s26, 512  ;;  %p627_p10 = scmp.lt.s32.totalorder %s836_s30, %s625_s26 }
  0x26   : > { %p622_p3 = pnand %p620_p1, %p606_p2  ;;  %p628_p5 = scmp.lt.s32.totalorder %s626_s27, %s619_s17 }
  0x28   : > { %p623_p11 = pneg %p622_p3  ;;  %p629_p7 = por %p628_p5, %p627_p10 }
  0x2a   : > { %p630_p8 = pnand %p629_p7, %p623_p11 }
  0x2c   : > { %633 = shalt.err (!%p630_p8)
}
  0x2d   : > { %533 = dma.hbm_to_vmem [thread:$0]  (!%p832_p12), %s826_s28, 256, %s836_s30, %s118_s4  }
  0x2e   : > { %p1042_p13 = scmp.lt.s32.totalorder %s734_s12, 5  ;;  %p1043_p0 = scmp.ge.s32.totalorder %s734_s12, 1 }
  0x2f   : > { %s879_s7 = scalar_lea.hbm %s1033_s1, %s521_s24  ;;  %s140_s8 = scalar_lea.vmem [#allocation5], %s506_s25 }
  0x30   : > { %p870_p4 = pnand %p1043_p0, %p1042_p13  ;;  %s148_s14 = sshll.u32 %s140_s8, 4  ;;  %s149_s14 = int_to_ptr.vmem [resolvable:$true] %s148_s14 }
  0x31   : > { %s137_s28 = scalar_lea.sflag [#allocation6], %s817_s23  ;;  %s634_s30 = scalar_lea.hbm %s879_s7, 256 }
  0x32   : > { %s1044_s29 = scalar_select %p870_p4, 1, 0 }
  0x33   : > { %p635_p10 = scmp.ne.s32.totalorder %s879_s7, %s634_s30  ;;  %s639_s24 = scalar_lea.hbm %s1033_s1, 1024 }
  0x34   : > { %p640_p1 = scmp.lt.u32.totalorder %s879_s7, %s1033_s1  ;;  %p641_p3 = scmp.lt.u32.totalorder %s639_s24, %s634_s30 }
  0x35   : > { %p637_p11 = pnand %p635_p10, %p606_p2  ;;  %p643_p7 = scmp.lt.u32.totalorder %s634_s30, %s879_s7 }
  0x36   : > { %p642_p5 = por %p641_p3, %p640_p1 }
  0x37   : > { %p638_p9 = pneg %p637_p11 }
  0x38   : > { %p644_p8 = por %p643_p7, %p642_p5 }
  0x3a   : > { %p645_p13 = pnand %p644_p8, %p638_p9 }
  0x3c   : > { %648 = shalt.err (!%p645_p13)
}
  0x3d   : > { %s649_s23 = scalar_lea.vmem %s149_s14, 256  ;;  %s737_s25 = smov [#allocation5]  }
  0x3e   : > { %p650_p0 = scmp.ne.s32.totalorder %s149_s14, %s649_s23  ;;  %s654_s26 = sshll.u32 %s737_s25, 4  ;;  %s655_s26 = int_to_ptr.vmem [resolvable:$false] %s654_s26 }
  0x3f   : > { %s656_s27 = scalar_lea.vmem %s655_s26, 512  ;;  %p657_p6 = scmp.lt.s32.totalorder %s149_s14, %s655_s26 }
  0x40   : > { %p652_p10 = pnand %p650_p0, %p606_p2  ;;  %p658_p4 = scmp.lt.s32.totalorder %s656_s27, %s649_s23 }
  0x42   : > { %p653_p11 = pneg %p652_p10  ;;  %p659_p1 = por %p658_p4, %p657_p6 }
  0x44   : > { %p660_p3 = pnand %p659_p1, %p653_p11 }
  0x46   : > { %663 = shalt.err (!%p660_p3)
}
  0x47   : > { %536 = dma.hbm_to_vmem [thread:$0]  (!%p832_p12), %s879_s7, 256, %s149_s14, %s137_s28  }
  0x48   : > { %p1045_p9 = scmp.ne.s32.totalorder %s1044_s29, 0 }
  0x49   : > { %s906_s5 = sand.u32 (!%p1045_p9), 1, %s726_s10   ;;  %p1046_p6 = scmp.ne.s32.totalorder (!%p1045_p9), %s1038_s20, 0 }
  0x4a   : > { %157 = sbr.rel (%p1045_p9) target bundleno = 362 (0x16a), region = 28  ;;  %s909_s6 = sshll.u32 (!%p1045_p9), %s906_s5, 4 }
  0x4b   : > { %s160_s8 = scalar_lea.sflag (!%p1045_p9), [#allocation3], %s906_s5  ;;  %s163_s30 = scalar_lea.vmem (!%p1045_p9), [#allocation2], %s909_s6 }
  0x51   : > { %709 = dma.done.wait (%p1046_p6), %s160_s8, 256  }
  0x52   : > { %711 = vsyncadd (%p1046_p6), %s160_s8, 4294967040  ;;  %s169_s3 = scalar_lea.sflag [#allocation6], %s906_s5  ;;  %s172_s29 = scalar_lea.vmem [#allocation5], %s909_s6 }
  0x53   : > { %713 = dma.done.wait (%p1046_p6), %s169_s3, 256  }
  0x54   : > { %715 = vsyncadd (%p1046_p6), %s169_s3, 4294967040  ;;  %v202_v0 = vlaneseq  ;;  %v199_v2 = vld [vmem:[%s172_s29 + $0x8] sm:$0xff]  ;;  %v198_v3 = vld [vmem:[%s172_s29] sm:$0xff]  ;;  %s738_s20 = smov 16   ;;  %s739_s7 = smov 112   ;;  %vm269_vm2 = vcmask 916480  }
  0x55   : > { %v222_v4 = vrot.slane %v199_v2, 7  ;;  %v233_v5 = vrot.slane %v199_v2, 1  ;;  %v221_v6 = vrot.slane %v198_v3, 7  ;;  %v232_v7 = vrot.slane %v198_v3, 1  ;;  %s740_s14 = smov 1   ;;  %s741_s28 = smov 127  }
  0x56   : > { %v206_v1 = vshrl.u32 %v202_v0, 7  ;;  %v923_v16 = vand.u32 127, %v202_v0  ;;  %vm254_vm3 = vcmask 130048   ;;  %v200_v32 = vld [vmem:[%s163_s30] sm:$0xff]  ;;  %v201_v33 = vld [vmem:[%s163_s30 + $0x8] sm:$0xff]  ;;  %vm292_vm6 = vcmask 7168  }
  0x57   : > { %v357_v34 = vsub.f32 %v198_v3, %v200_v32  ;;  %v358_v35 = vsub.f32 %v199_v2, %v201_v33  ;;  %v327_v40 = vsub.f32 2.1, %v198_v3  ;;  %v328_v41 = vsub.f32 2.1, %v199_v2  ;;  %s523_s4 = sshll.u32 %s780_s13, 8  ;;  %s197_s16 = scalar_lea.vmem [#allocation7], %s909_s6 }
  0x58   : > { %vm217_vm0 = vcmp.eq.s32.totalorder %v206_v1, 0  ;;  %vm218_vm1 = vcmp.eq.s32.totalorder %v206_v1, 7  ;;  %v926_v17 = vadd.s32 128, %v923_v16  ;;  %vm213_vm4 = vcmp.lt.s32.totalorder %v923_v16, 16  ;;  %s410_s24 = sshll.u32 %s197_s16, 4  ;;  %s989_s23 = scalar_lea.hbm %s1034_s2, %s523_s4  ;;  %s991_s24 = int_to_ptr.vmem [resolvable:$true] %s410_s24 }
  0x59   : > { %v231_v8 = vsel %vm217_vm0, %v199_v2, %v222_v4  ;;  %v242_v9 = vsel %vm218_vm1, %v199_v2, %v233_v5  ;;  %v230_v10 = vsel %vm217_vm0, %v198_v3, %v221_v6  ;;  %v241_v11 = vsel %vm218_vm1, %v198_v3, %v232_v7  ;;  %s396_s13 = scalar_lea.sflag [#allocation4], %s906_s5  ;;  %s664_s25 = scalar_lea.vmem %s991_s24, 256 }
  0x5a   : > { %v244_v12 = vmax.f32 %v231_v8, %v242_v9  ;;  %v243_v13 = vmax.f32 %v230_v10, %v241_v11  ;;  %vm216_vm5 = vcmp.ge.s32.totalorder %v926_v17, 240  ;;  %v942_v36 = vand.u32 2147483647, %v357_v34  ;;  %p665_p12 = scmp.ne.s32.totalorder %s991_s24, %s664_s25  ;;  %p1055_p2 = scmp.ne.s32.totalorder %s1039_s21, 0 }
  0x5b   : > { %v944_v37 = vand.u32 2147483647, %v358_v35  ;;  %v329_v42 = vmul.f32 -0.6931472, %v327_v40  ;;  %v330_v43 = vmul.f32 -0.6931472, %v328_v41 }
  0x5c   : > { %v246_v14 = vmax.f32 %v199_v2, %v244_v12  ;;  %v245_v15 = vmax.f32 %v198_v3, %v243_v13  ;;  %v361_v38 = vmax.f32 %v942_v36, 1e-30  ;;  %vm307_vm9 = vcmask 1039360   ;;  %p666_p4 = pnand %p665_p12, %p1055_p2  ;;  %s743_s26 = smov [#allocation7]  }
  0x5d   : > { %v362_v39 = vmax.f32 %v944_v37, 1e-30  ;;  %v331_v44 = vmul.f32 1.442695, %v329_v42  ;;  %v333_v45 = vmul.f32 1.442695, %v330_v43 }
  0x5e   : > { %248 = vrot.lane.b32.xlu0 %v246_v14, %s738_s20  ;;  %265 = vrot.lane.b32.xlu1 %v245_v15, %s739_s7  ;;  %580 = vlog2.f32 %v361_v38  ;;  %vm385_vm12 = vcmp.lt.f32.partialorder %v942_v36, 0.5  ;;  %vm386_vm13 = vcmp.lt.f32.partialorder %v944_v37, 0.5  ;;  %p667_p5 = pneg %p666_p4  ;;  %s668_s27 = sshll.u32 %s743_s26, 4  ;;  %s669_s27 = int_to_ptr.vmem [resolvable:$false] %s668_s27 }
  0x5f   : > { %582 = vlog2.f32 %v362_v39  ;;  %s670_s6 = scalar_lea.vmem %s669_s27, 512  ;;  %p671_p7 = scmp.lt.s32.totalorder %s991_s24, %s669_s27 }
  0x60   : > { %584 = vpow2.f32 %v331_v44  ;;  %p672_p8 = scmp.lt.s32.totalorder %s670_s6, %s664_s25 }
  0x61   : > { %586 = vpow2.f32 %v333_v45 }
  0x62   : > { %267 = vrot.lane.b32.xlu1 %v246_v14, %s739_s7  ;;  %252 = vrot.lane.b32.xlu0 %v245_v15, %s738_s20  ;;  %p673_p13 = por %p672_p8, %p671_p7 }
  0x64   : > { %p674_p0 = pnand %p673_p13, %p667_p5 }
  0x68   : > { %v581_v46 = vpop.eup %580 }
  0x69   : > { %v583_v47 = vpop.eup %582  ;;  %v364_v48 = vmul.f32 0.6931472, %v581_v46 }
  0x6a   : > { %v366_v49 = vmul.f32 0.6931472, %v583_v47  ;;  %v585_v52 = vpop.eup %584 }
  0x6b   : > { %v367_v50 = vmul.f32 %v364_v48, %v327_v40  ;;  %v587_v53 = vpop.eup %586  ;;  %v337_v56 = vadd.f32 1.0, %v585_v52  ;;  %v335_v3 = vmul.f32 2.0, %v585_v52 }
  0x6c   : > { %v368_v51 = vmul.f32 %v366_v49, %v328_v41  ;;  %v338_v57 = vadd.f32 1.0, %v587_v53  ;;  %v336_v4 = vmul.f32 2.0, %v587_v53 }
  0x6d   : > { %v369_v54 = vmul.f32 1.442695, %v367_v50 }
  0x6e   : > { %v371_v55 = vmul.f32 1.442695, %v368_v51 }
  0x6f   : > { %588 = vpow2.f32 %v369_v54 }
  0x70   : > { %590 = vpow2.f32 %v371_v55 }
  0x71   : > { %592 = vrcp.f32 %v337_v56 }
  0x72   : > { %594 = vrcp.f32 %v338_v57 }
  0x73   : > { %596 = vlog2.f32 %v337_v56  ;;  %v742_v56 = vmov 1.0  }
  0x74   : > { %598 = vlog2.f32 %v338_v57 }
  0x79   : > { %v589_v58 = vpop.eup %588 }
  0x7a   : > { %v591_v59 = vpop.eup %590  ;;  %v373_v62 = vadd.f32 1.0, %v589_v58 }
  0x7b   : > { %v593_v60 = vpop.eup %592  ;;  %v374_v63 = vadd.f32 1.0, %v591_v59 }
  0x7c   : > { %v595_v61 = vpop.eup %594  ;;  %v341_v0 = vmul.f32 14.0, %v593_v60  ;;  %600 = vlog2.f32 %v373_v62 }
  0x7d   : > { %v342_v1 = vmul.f32 14.0, %v595_v61  ;;  %602 = vlog2.f32 %v374_v63  ;;  %v597_v2 = vpop.eup %596 }
  0x7e   : > { %v343_v5 = vmul.f32 %v341_v0, %v327_v40  ;;  %v599_v7 = vpop.eup %598  ;;  %v350_v10 = vmul.f32 0.6931472, %v597_v2 }
  0x7f   : > { %v344_v6 = vmul.f32 %v342_v1, %v328_v41  ;;  %v352_v11 = vmul.f32 0.6931472, %v599_v7 }
  0x80   : > { %v345_v8 = vmul.f32 %v343_v5, %v335_v3 }
  0x81   : > { %v346_v9 = vmul.f32 %v344_v6, %v336_v4 }
  0x86   : > { %v601_v12 = vpop.eup %600 }
  0x87   : > { %v603_v13 = vpop.eup %602 }
  0xd0   : > { %v249_v18 = vpop.permute.xlu0 %248  ;;  %v266_v19 = vpop.permute.xlu1 %265 }
  0xd4   : > { %v268_v20 = vpop.permute.xlu1 %267  ;;  %v253_v21 = vpop.permute.xlu0 %252 }
  0xd5   : > { %v270_v22 = vsel %vm269_vm2, %v266_v19, %v268_v20  ;;  %v274_v23 = vsel %vm269_vm2, %v268_v20, %v266_v19  ;;  %v255_v24 = vsel %vm254_vm3, %v253_v21, %v249_v18  ;;  %v258_v25 = vsel %vm254_vm3, %v249_v18, %v253_v21 }
  0xd6   : > { %v280_v26 = vsel %vm216_vm5, %v246_v14, %v274_v23  ;;  %v263_v27 = vsel %vm213_vm4, %v245_v15, %v258_v25  ;;  %v353_v18 = vmul.f32 14.0, %v350_v10  ;;  %v354_v19 = vmul.f32 14.0, %v352_v11 }
  0xd7   : > { %v281_v28 = vmax.f32 %v263_v27, %v270_v22  ;;  %v282_v29 = vmax.f32 %v255_v24, %v280_v26  ;;  %v207_v20 = vand.u32 15, %v923_v16  ;;  %v208_v21 = vand.u32 15, %v926_v17 }
  0xd8   : > { %v376_v24 = vmul.f32 0.6931472, %v601_v12  ;;  %v378_v25 = vmul.f32 0.6931472, %v603_v13 }
  0xd9   : > { %v930_v30 = vmax.f32 %v245_v15, %v281_v28  ;;  %v932_v31 = vmax.f32 %v246_v14, %v282_v29  ;;  %v347_v14 = vmul.f32 0.5, %v345_v8  ;;  %v348_v15 = vmul.f32 0.5, %v346_v9 }
  0xda   : > { %v381_v28 = vmul.f32 %v942_v36, %v345_v8  ;;  %v382_v29 = vmul.f32 %v944_v37, %v346_v9  ;;  %vm952_vm7 = vcmp.eq.s32.totalorder %v207_v20, 0  ;;  %vm956_vm8 = vcmp.eq.s32.totalorder %v208_v21, 0 }
  0xdb   : > { %290 = vrot.lane.b32.xlu1 %v930_v30, %s740_s14  ;;  %286 = vrot.lane.b32.xlu0 %v932_v31, %s740_s14  ;;  %v355_v26 = vsub.f32 %v347_v14, %v353_v18  ;;  %v356_v27 = vsub.f32 %v348_v15, %v354_v19  ;;  %vm960_vm10 = vcmp.eq.s32.totalorder %v207_v20, 15  ;;  %vm964_vm11 = vcmp.eq.s32.totalorder %v208_v21, 15 }
  0xdc   : > { %v379_v39 = vmul.f32 14.0, %v376_v24  ;;  %v380_v40 = vmul.f32 14.0, %v378_v25 }
  0xdd   : > { %v383_v42 = vsub.f32 %v381_v28, %v355_v26  ;;  %v384_v43 = vsub.f32 %v382_v29, %v356_v27 }
  0xdf   : > { %305 = vrot.lane.b32.xlu1 %v932_v31, %s741_s28  ;;  %303 = vrot.lane.b32.xlu0 %v930_v30, %s741_s28  ;;  %v387_v54 = vsel %vm385_vm12, %v379_v39, %v383_v42  ;;  %v388_v55 = vsel %vm386_vm13, %v380_v40, %v384_v43 }
 0x14d   : > { %v291_v22 = vpop.permute.xlu1 %290  ;;  %v287_v23 = vpop.permute.xlu0 %286 }
 0x14e   : > { %v293_v16 = vsel %vm292_vm6, %v291_v22, %v287_v23  ;;  %v296_v17 = vsel %vm292_vm6, %v287_v23, %v291_v22 }
 0x14f   : > { %v301_v46 = vsel %vm952_vm7, %v930_v30, %v296_v17  ;;  %v302_v47 = vsel %vm956_vm8, %v932_v31, %v293_v16 }
 0x151   : > { %v306_v38 = vpop.permute.xlu1 %305  ;;  %v304_v41 = vpop.permute.xlu0 %303 }
 0x152   : > { %v308_v44 = vsel %vm307_vm9, %v304_v41, %v306_v38  ;;  %v312_v45 = vsel %vm307_vm9, %v306_v38, %v304_v41 }
 0x153   : > { %v317_v48 = vsel %vm960_vm10, %v930_v30, %v308_v44  ;;  %v318_v49 = vsel %vm964_vm11, %v932_v31, %v312_v45 }
 0x154   : > { %v319_v50 = vmax.f32 %v301_v46, %v317_v48  ;;  %v320_v51 = vmax.f32 %v302_v47, %v318_v49 }
 0x156   : > { %v321_v52 = vmax.f32 %v930_v30, %v319_v50  ;;  %v322_v53 = vmax.f32 %v932_v31, %v320_v51 }
 0x158   : > { %vm323_vm14 = vcmp.gt.f32.partialorder %v321_v52, 0.2  ;;  %vm324_vm15 = vcmp.gt.f32.partialorder %v322_v53, 0.2 }
 0x159   : > { %v325_v57 = vsel %vm323_vm14, 11.0, %v742_v56  ;;  %v326_v36 = vsel %vm324_vm15, 11.0, %v742_v56 }
 0x15a   : > { %v389_v58 = vmul.f32 %v387_v54, %v325_v57  ;;  %v390_v37 = vmul.f32 %v388_v55, %v326_v36 }
 0x15c   : > { %393 = vst [vmem:[%s197_s16] sm:$0xff] %v389_v58  ;;  %394 = vst [vmem:[%s197_s16 + $0x8] sm:$0xff] %v390_v37 }
 0x15d   : > { %677 = shalt.err (!%p674_p0)
}
 0x15e   : > { %s678_s5 = scalar_lea.hbm %s989_s23, 256  ;;  %s682_s3 = scalar_lea.hbm %s1034_s2, 1024 }
 0x15f   : > { %p679_p10 = scmp.ne.s32.totalorder %s989_s23, %s678_s5  ;;  %p683_p3 = scmp.lt.u32.totalorder %s989_s23, %s1034_s2 }
 0x160   : > { %p684_p9 = scmp.lt.u32.totalorder %s682_s3, %s678_s5  ;;  %p686_p12 = scmp.lt.u32.totalorder %s678_s5, %s989_s23 }
 0x161   : > { %p680_p11 = pnand %p679_p10, %p1055_p2 }
 0x162   : > { %p685_p6 = por %p684_p9, %p683_p3 }
 0x163   : > { %p681_p1 = pneg %p680_p11 }
 0x164   : > { %p687_p4 = por %p686_p12, %p685_p6 }
 0x166   : > { %p688_p5 = pnand %p687_p4, %p681_p1 }
 0x168   : > { %691 = shalt.err (!%p688_p5)
}
 0x169   : > { %528 = dma.vmem_to_hbm [thread:$0]  (%p1055_p2), %s991_s24, 256, %s989_s23, %s396_s13  }
 0x16a PF: > { %p542_p7 = scmp.ge.s32.totalorder %s734_s12, 2  ;;  %s422_s7 = sand.u32 1, %s722_s9  }
 0x16b   : > { %p1056_p8 = scmp.ne.s32.totalorder %s1040_s22, 0  ;;  %s423_s14 = scalar_lea.sflag [#allocation4], %s422_s7 }
 0x16d   : > { %p538_p13 = pnand %p542_p7, %p1056_p8 }
 0x16f   : > { %717 = dma.done.wait (!%p538_p13), %s423_s14, 256  }
 0x170   : > { %719 = vsyncadd (!%p538_p13), %s423_s14, 4294967040  ;;  %p18_p0 = scmp.ge.s32.totalorder %s784_s15, 6   ;;  %s1057_s9 = smov %s726_s10 }
 0x171   : > { %s1058_s10 = smov %s730_s11  ;;  %s1059_s11 = smov %s796_s18 }
 0x172   : > { %s1060_s12 = smov %s784_s15  ;;  %20 = sbr.rel (!%p18_p0) target bundleno = 7 (0x7), region = 86 }
 0x179   :  { %428 = vsyncpa [#allocation3], 1 }
 0x17a   :  { %430 = vsyncpa [#allocation3 + $0x1], 1 }
 0x17b   :  { %431 = vsyncpa [#allocation6], 1 }
 0x17c   :  { %433 = vsyncpa [#allocation6 + $0x1], 1 }
 0x17d   :  { %434 = vsyncpa [#allocation4], 1 }
 0x17e   :  { %436 = vsyncpa [#allocation4 + $0x1], 1 }

</bundles_post_ra>
